<compile_context>
chip_gen: v7x
topology: tpu7x:2x2x1
jax: 0.10.0
libtpu: 0.0.40
codegen_flags: <defaults>
</compile_context>

<pallas_src>
import functools

import jax
import jax.numpy as jnp
from jax import lax
from jax.experimental import pallas as pl
from jax.experimental.pallas import tpu as pltpu

LANE = 128
SUBLANE = 8


def _round_up(x, m):
    return ((x + m - 1) // m) * m


def _tile_body(i, idx_ref, tgt_ref, table_ref, v_true, n_true):
    """Per-tile compute: returns (logits_tile, partial_loss_sum)."""
    tile_n = idx_ref.shape[0]
    v_pad = table_ref.shape[1]

    idx = idx_ref[...]                                          # (tile_n, 1) i32
    tgt = tgt_ref[...]                                          # (tile_n, 1) i32

    col = lax.broadcasted_iota(jnp.int32, (tile_n, v_pad), 1)   # lane ids
    row = lax.broadcasted_iota(jnp.int32, (tile_n, 1), 0) + i * tile_n

    # Embedding gather as an exact one-hot matmul on the MXU.
    one_hot = (col == idx).astype(table_ref.dtype)              # (tile_n, v_pad)
    logits = jnp.dot(one_hot, table_ref[...],
                     preferred_element_type=jnp.float32)        # (tile_n, v_pad)

    # Cross-entropy with lane (col >= v_true) and row (row >= n_true) masking.
    neg_inf = jnp.float32(-jnp.inf)
    masked_logits = jnp.where(col < v_true, logits, neg_inf)
    m = jnp.max(masked_logits, axis=-1, keepdims=True)          # (tile_n, 1)
    lse = jnp.log(jnp.sum(jnp.exp(masked_logits - m), axis=-1, keepdims=True)) + m
    # Target gather without a second materialized one-hot temporary.
    tgt_logit = jnp.sum(jnp.where(col == tgt, logits, 0.0), axis=-1, keepdims=True)
    losses = jnp.where(row < n_true, lse - tgt_logit, 0.0)      # (tile_n, 1)
    return logits, jnp.sum(losses)


def _logits_loss_kernel(idx_ref, tgt_ref, table_ref, logits_ref, loss_ref, *,
                        v_true, n_true):
    i = pl.program_id(0)

    @pl.when(i == 0)
    def _():
        loss_ref[...] = jnp.zeros_like(loss_ref)

    logits, partial_loss = _tile_body(i, idx_ref, tgt_ref, table_ref, v_true, n_true)
    logits_ref[...] = logits
    loss_ref[...] = loss_ref[...] + partial_loss

    @pl.when(i == pl.num_programs(0) - 1)
    def _():
        loss_ref[...] = loss_ref[...] * (1.0 / n_true)


def _loss_only_kernel(idx_ref, tgt_ref, table_ref, loss_ref, *, v_true, n_true):
    i = pl.program_id(0)

    @pl.when(i == 0)
    def _():
        loss_ref[...] = jnp.zeros_like(loss_ref)

    _, partial_loss = _tile_body(i, idx_ref, tgt_ref, table_ref, v_true, n_true)
    loss_ref[...] = loss_ref[...] + partial_loss

    @pl.when(i == pl.num_programs(0) - 1)
    def _():
        loss_ref[...] = loss_ref[...] * (1.0 / n_true)


def bigram_forward(idx, table, targets=None, *, return_logits=True, tile_n=512):
    """Pallas version of BigramLanguageModel.forward(idx, targets).

    Returns (logits, loss) with PyTorch semantics:
      targets given -> logits is (B*T, V), loss is a scalar.
      targets=None  -> logits is (B, T, V), loss is None.
    Set return_logits=False (with targets) for the loss-only fast path that
    skips the logits HBM writeback.
    """
    B, T = idx.shape
    V = table.shape[0]
    N = B * T

    v_pad = _round_up(V, LANE)
    tile_n = max(SUBLANE, min(int(tile_n), _round_up(N, SUBLANE)))
    tile_n = _round_up(tile_n, SUBLANE)
    n_pad = _round_up(N, tile_n)
    num_tiles = n_pad // tile_n

    # Lane/row-padded operands (zero padding; masked inside the kernel).
    table_p = jnp.zeros((v_pad, v_pad), jnp.float32).at[:V, :V].set(
        table.astype(jnp.float32))
    idx_p = jnp.zeros((n_pad, 1), jnp.int32).at[:N, 0].set(
        idx.reshape(N).astype(jnp.int32))
    if targets is None:
        tgt_p = jnp.zeros((n_pad, 1), jnp.int32)
    else:
        tgt_p = jnp.zeros((n_pad, 1), jnp.int32).at[:N, 0].set(
            targets.reshape(N).astype(jnp.int32))

    grid = (num_tiles,)
    in_specs = [
        pl.BlockSpec((tile_n, 1), lambda i: (i, 0)),      # idx
        pl.BlockSpec((tile_n, 1), lambda i: (i, 0)),      # targets
        pl.BlockSpec((v_pad, v_pad), lambda i: (0, 0)),   # table, VMEM-resident
    ]
    compiler_params = pltpu.CompilerParams(
        # Loss output block is revisited every step -> reduction-style axis.
        dimension_semantics=("arbitrary",),
        vmem_limit_bytes=32 * 1024 * 1024,
    )

    if return_logits or targets is None:
        kernel = functools.partial(_logits_loss_kernel, v_true=V, n_true=N)
        logits_p, loss = pl.pallas_call(
            kernel,
            grid=grid,
            in_specs=in_specs,
            out_specs=(
                pl.BlockSpec((tile_n, v_pad), lambda i: (i, 0)),   # logits tiles
                pl.BlockSpec((1, 1), lambda i: (0, 0)),            # resident loss acc
            ),
            out_shape=(
                jax.ShapeDtypeStruct((n_pad, v_pad), jnp.float32),
                jax.ShapeDtypeStruct((1, 1), jnp.float32),
            ),
            compiler_params=compiler_params,
        )(idx_p, tgt_p, table_p)
        logits = logits_p[:N, :V]
        if targets is None:
            # TODO(synk): a logits-only kernel would skip the (discarded) loss epilogue.
            return logits.reshape(B, T, V), None
        return logits, loss[0, 0]

    # Loss-only fast path: no (N, V_pad) logits writeback to HBM.
    kernel = functools.partial(_loss_only_kernel, v_true=V, n_true=N)
    loss = pl.pallas_call(
        kernel,
        grid=grid,
        in_specs=in_specs,
        out_specs=pl.BlockSpec((1, 1), lambda i: (0, 0)),
        out_shape=jax.ShapeDtypeStruct((1, 1), jnp.float32),
        compiler_params=compiler_params,
    )(idx_p, tgt_p, table_p)
    return None, loss[0, 0]


def reference_forward(idx, targets, table):
    """Pure-JAX reference mirroring the PyTorch semantics."""
    B, T = idx.shape
    N = B * T
    logits = table[idx.reshape(N)]                                        # (N, V)
    lse = jax.scipy.special.logsumexp(logits, axis=-1)                    # (N,)
    tgt_logit = jnp.take_along_axis(logits, targets.reshape(N)[:, None], axis=-1)[:, 0]
    loss = jnp.mean(lse - tgt_logit)
    return logits, loss


if __name__ == "__main__":
    # vocab_size = len(set(text)) as in the original script.
    text = "the quick brown fox jumps over the lazy dog. pack my box!"
    vocab_size = len(set(text))

    key = jax.random.PRNGKey(0)
    k_table, k_idx, k_tgt = jax.random.split(key, 3)

    # nn.Embedding(vocab_size, vocab_size) weight, ~N(0, 1) init.
    table = jax.random.normal(k_table, (vocab_size, vocab_size), dtype=jnp.float32)

    B, T = 2, 8
    idx = jax.random.randint(k_idx, (B, T), 0, vocab_size, dtype=jnp.int32)
    targets = jax.random.randint(k_tgt, (B, T), 0, vocab_size, dtype=jnp.int32)

    ref_logits, ref_loss = reference_forward(idx, targets, table)

    # Full path (logits + loss), single tile.
    logits, loss = bigram_forward(idx, table, targets)
    jax.block_until_ready((logits, loss))
    assert logits.shape == (B * T, vocab_size)
    assert jnp.allclose(logits, ref_logits, atol=1e-5, rtol=1e-5)
    assert jnp.allclose(loss, ref_loss, atol=1e-5, rtol=1e-5)

    # Multi-tile path: forces the grid + cross-tile loss accumulation.
    logits2, loss2 = bigram_forward(idx, table, targets, tile_n=8)
    jax.block_until_ready((logits2, loss2))
    assert jnp.allclose(logits2, ref_logits, atol=1e-5, rtol=1e-5)
    assert jnp.allclose(loss2, ref_loss, atol=1e-5, rtol=1e-5)

    # Loss-only fast path (skips logits HBM writeback).
    no_logits, loss3 = bigram_forward(idx, table, targets, return_logits=False, tile_n=8)
    jax.block_until_ready(loss3)
    assert no_logits is None
    assert jnp.allclose(loss3, ref_loss, atol=1e-5, rtol=1e-5)

    # targets=None path, like PyTorch forward(idx): (B, T, V) logits, loss=None.
    logits4, loss4 = bigram_forward(idx, table, None)
    jax.block_until_ready(logits4)
    assert loss4 is None
    assert jnp.allclose(logits4, ref_logits.reshape(B, T, vocab_size), atol=1e-5, rtol=1e-5)

    # TODO(synk): generate() (autoregressive multinomial sampling loop) is host-side
    # control flow, not a kernel hot path; only forward() is implemented here.
    print("KERNEL_OK")
</pallas_src>

<mosaic_0001>
module attributes {stable_mosaic.version = 11 : i64} {
  func.func @_logits_loss_kernel(%arg0: i32, %arg1: memref<16x1xi32, #tpu.memory_space<vmem>>, %arg2: memref<16x1xi32, #tpu.memory_space<vmem>>, %arg3: memref<128x128xf32, #tpu.memory_space<vmem>>, %arg4: memref<16x128xf32, #tpu.memory_space<vmem>>, %arg5: memref<1x1xf32, #tpu.memory_space<vmem>>) attributes {dimension_semantics = [#tpu.dimension_semantics<arbitrary>], iteration_bounds = array<i64: 1>, scalar_prefetch = 0 : i64, scratch_operands = 0 : i64, tpu.core_type = #tpu.core_type<tc>, window_params = [{transform_indices = @transform_0, window_bounds = array<i64: 16, 1>}, {transform_indices = @transform_1, window_bounds = array<i64: 16, 1>}, {pipeline_mode = #tpu.pipeline_mode<synchronous>, transform_indices = @transform_2, window_bounds = array<i64: 128, 128>}, {transform_indices = @transform_3, window_bounds = array<i64: 16, 128>}, {pipeline_mode = #tpu.pipeline_mode<synchronous>, transform_indices = @transform_4, window_bounds = array<i64: 1, 1>}]} {
    %c0_i32 = arith.constant 0 : i32
    %0 = arith.cmpi eq, %arg0, %c0_i32 : i32
    %1 = arith.extui %0 : i1 to i32
    %c0_i32_0 = arith.constant 0 : i32
    %2 = arith.cmpi ne, %1, %c0_i32_0 : i32
    scf.if %2 {
      %cst_22 = arith.constant 0.000000e+00 : f32
      %52 = vector.broadcast %cst_22 : f32 to vector<1x1xf32>
      %c0_23 = arith.constant 0 : index
      %c0_24 = arith.constant 0 : index
      %53 = vector.load %arg5[%c0_23, %c0_24] : memref<1x1xf32, #tpu.memory_space<vmem>>, vector<1x1xf32>
      tpu.vector_store %arg5[%c0_23, %c0_24], %52 {strides = array<i32>} : memref<1x1xf32, #tpu.memory_space<vmem>>, vector<1x1xf32>,
    } else {
    }
    %c0 = arith.constant 0 : index
    %c0_1 = arith.constant 0 : index
    %3 = vector.load %arg1[%c0, %c0_1] : memref<16x1xi32, #tpu.memory_space<vmem>>, vector<16x1xi32>
    %c0_2 = arith.constant 0 : index
    %c0_3 = arith.constant 0 : index
    %4 = vector.load %arg2[%c0_2, %c0_3] : memref<16x1xi32, #tpu.memory_space<vmem>>, vector<16x1xi32>
    %5 = tpu.iota {dimensions = array<i32: 1>} : vector<16x128xi32>
    %6 = tpu.iota {dimensions = array<i32: 0>} : vector<16x1xi32>
    %c16_i32 = arith.constant 16 : i32
    %7 = arith.muli %arg0, %c16_i32 : i32
    %8 = vector.broadcast %7 : i32 to vector<16x1xi32>
    %9 = arith.addi %6, %8 : vector<16x1xi32>
    %10 = vector.broadcast %3 : vector<16x1xi32> to vector<16x128xi32>
    %11 = arith.cmpi eq, %5, %10 : vector<16x128xi32>
    %12 = arith.extui %11 : vector<16x128xi1> to vector<16x128xi32>
    %13 = arith.sitofp %12 : vector<16x128xi32> to vector<16x128xf32>
    %c0_4 = arith.constant 0 : index
    %c0_5 = arith.constant 0 : index
    %14 = vector.load %arg3[%c0_4, %c0_5] : memref<128x128xf32, #tpu.memory_space<vmem>>, vector<128x128xf32>
    %cst = arith.constant dense<0.000000e+00> : vector<16x128xf32>
    %15 = tpu.matmul %13, %14, %cst {dimension_numbers = #tpu.dot_dimension_numbers<[1], [0], [0], [1], [0, 0, 1, 1], [], []>} : vector<16x128xf32>, vector<128x128xf32>, vector<16x128xf32> -> vector<16x128xf32>
    %c29_i32 = arith.constant 29 : i32
    %16 = vector.broadcast %c29_i32 : i32 to vector<16x128xi32>
    %17 = arith.cmpi slt, %5, %16 : vector<16x128xi32>
    %cst_6 = arith.constant 0xFF800000 : f32
    %18 = vector.broadcast %cst_6 : f32 to vector<16x128xf32>
    %19 = arith.select %17, %15, %18 : vector<16x128xi1>, vector<16x128xf32>
    %cst_7 = arith.constant dense<0xFF800000> : vector<16xf32>
    %20 = vector.multi_reduction <maximumf>, %19, %cst_7 [1] : vector<16x128xf32> to vector<16xf32>
    %21 = vector.shape_cast %20 : vector<16xf32> to vector<16x1xf32>
    %22 = vector.broadcast %21 : vector<16x1xf32> to vector<16x128xf32>
    %23 = arith.subf %19, %22 : vector<16x128xf32>
    %24 = math.exp %23 : vector<16x128xf32>
    %cst_8 = arith.constant dense<0.000000e+00> : vector<16xf32>
    %25 = vector.multi_reduction <add>, %24, %cst_8 [1] : vector<16x128xf32> to vector<16xf32>
    %26 = vector.shape_cast %25 : vector<16xf32> to vector<16x1xf32>
    %27 = math.log %26 : vector<16x1xf32>
    %28 = arith.addf %27, %21 : vector<16x1xf32>
    %29 = vector.broadcast %4 : vector<16x1xi32> to vector<16x128xi32>
    %30 = arith.cmpi eq, %5, %29 : vector<16x128xi32>
    %cst_9 = arith.constant 0.000000e+00 : f32
    %31 = vector.broadcast %cst_9 : f32 to vector<16x128xf32>
    %32 = arith.select %30, %15, %31 : vector<16x128xi1>, vector<16x128xf32>
    %cst_10 = arith.constant dense<0.000000e+00> : vector<16xf32>
    %33 = vector.multi_reduction <add>, %32, %cst_10 [1] : vector<16x128xf32> to vector<16xf32>
    %34 = vector.shape_cast %33 : vector<16xf32> to vector<16x1xf32>
    %c16_i32_11 = arith.constant 16 : i32
    %35 = vector.broadcast %c16_i32_11 : i32 to vector<16x1xi32>
    %36 = arith.cmpi slt, %9, %35 : vector<16x1xi32>
    %37 = arith.subf %28, %34 : vector<16x1xf32>
    %cst_12 = arith.constant 0.000000e+00 : f32
    %38 = vector.broadcast %cst_12 : f32 to vector<16x1xf32>
    %39 = arith.select %36, %37, %38 : vector<16x1xi1>, vector<16x1xf32>
    %40 = vector.shape_cast %39 : vector<16x1xf32> to vector<1x16x1xf32>
    %cst_13 = arith.constant dense<0.000000e+00> : vector<1xf32>
    %41 = vector.multi_reduction <add>, %40, %cst_13 [1, 2] : vector<1x16x1xf32> to vector<1xf32>
    %42 = vector.shape_cast %41 : vector<1xf32> to vector<1x1x1xf32>
    %43 = vector.extract %42[0, 0, 0] : f32 from vector<1x1x1xf32>
    %c0_14 = arith.constant 0 : index
    %c0_15 = arith.constant 0 : index
    %44 = vector.load %arg4[%c0_14, %c0_15] : memref<16x128xf32, #tpu.memory_space<vmem>>, vector<16x128xf32>
    tpu.vector_store %arg4[%c0_14, %c0_15], %15 {strides = array<i32>} : memref<16x128xf32, #tpu.memory_space<vmem>>, vector<16x128xf32>,
    %c0_16 = arith.constant 0 : index
    %c0_17 = arith.constant 0 : index
    %45 = vector.load %arg5[%c0_16, %c0_17] : memref<1x1xf32, #tpu.memory_space<vmem>>, vector<1x1xf32>
    %46 = vector.broadcast %43 : f32 to vector<1x1xf32>
    %47 = arith.addf %45, %46 : vector<1x1xf32>
    %c0_18 = arith.constant 0 : index
    %c0_19 = arith.constant 0 : index
    %48 = vector.load %arg5[%c0_18, %c0_19] : memref<1x1xf32, #tpu.memory_space<vmem>>, vector<1x1xf32>
    tpu.vector_store %arg5[%c0_18, %c0_19], %47 {strides = array<i32>} : memref<1x1xf32, #tpu.memory_space<vmem>>, vector<1x1xf32>,
    %c0_i32_20 = arith.constant 0 : i32
    %49 = arith.cmpi eq, %arg0, %c0_i32_20 : i32
    %50 = arith.extui %49 : i1 to i32
    %c0_i32_21 = arith.constant 0 : i32
    %51 = arith.cmpi ne, %50, %c0_i32_21 : i32
    scf.if %51 {
      %c0_22 = arith.constant 0 : index
      %c0_23 = arith.constant 0 : index
      %52 = vector.load %arg5[%c0_22, %c0_23] : memref<1x1xf32, #tpu.memory_space<vmem>>, vector<1x1xf32>
      %cst_24 = arith.constant 6.250000e-02 : f32
      %53 = vector.broadcast %cst_24 : f32 to vector<1x1xf32>
      %54 = arith.mulf %52, %53 : vector<1x1xf32>
      %c0_25 = arith.constant 0 : index
      %c0_26 = arith.constant 0 : index
      %55 = vector.load %arg5[%c0_25, %c0_26] : memref<1x1xf32, #tpu.memory_space<vmem>>, vector<1x1xf32>
      tpu.vector_store %arg5[%c0_25, %c0_26], %54 {strides = array<i32>} : memref<1x1xf32, #tpu.memory_space<vmem>>, vector<1x1xf32>,
    } else {
    }
    return
  }
  func.func @transform_0(%arg0: i32) -> (i32, i32) {
    %c0_i32 = arith.constant 0 : i32
    %c0_i32_0 = arith.constant 0 : i32
    return %arg0, %c0_i32 : i32, i32
  }
  func.func @transform_1(%arg0: i32) -> (i32, i32) {
    %c0_i32 = arith.constant 0 : i32
    %c0_i32_0 = arith.constant 0 : i32
    return %arg0, %c0_i32 : i32, i32
  }
  func.func @transform_2(%arg0: i32) -> (i32, i32) {
    %c0_i32 = arith.constant 0 : i32
    %c0_i32_0 = arith.constant 0 : i32
    %c0_i32_1 = arith.constant 0 : i32
    return %c0_i32, %c0_i32_0 : i32, i32
  }
  func.func @transform_3(%arg0: i32) -> (i32, i32) {
    %c0_i32 = arith.constant 0 : i32
    %c0_i32_0 = arith.constant 0 : i32
    return %arg0, %c0_i32 : i32, i32
  }
  func.func @transform_4(%arg0: i32) -> (i32, i32) {
    %c0_i32 = arith.constant 0 : i32
    %c0_i32_0 = arith.constant 0 : i32
    %c0_i32_1 = arith.constant 0 : i32
    return %c0_i32, %c0_i32_0 : i32, i32
  }
}

</mosaic_0001>

<bundles_post_ra>
// kernel: tpu_custom_call.1
= control target key start
LH: loop header
LB: loop body
LE: loop exit
PB: predicated region body
PF: predicated region fallthrough
CT: control target
= control target key end

     0   :  { %10 = vsyncpa [#allocation3], 0  ;;  %s525_s0 = inlined_call_operand.vmem [shape: s32[16,1], index: 0, kind: input, shape index: {}]   ;;  %s526_s1 = inlined_call_operand.vmem [shape: s32[16,1], index: 1, kind: input, shape index: {}]   ;;  %s527_s2 = inlined_call_operand.hbm [shape: f32[128,128], index: 2, kind: input, shape index: {}]   ;;  %s528_s3 = inlined_call_operand.hbm [shape: f32[16,128], index: 3, kind: output, shape index: {0}]   ;;  %s529_s4 = inlined_call_operand.hbm [shape: f32[1,1], index: 4, kind: output, shape index: {1}]  }
   0x1   :  { %11 = vsyncpa [#allocation4], 0 }
   0x2   :  { %12 = vsyncpa [#allocation7], 0  ;;  %s435_s15 = smov [#allocation2]   ;;  %s363_s19 = scalar_lea.hbm %s527_s2, 2048 }
   0x3   :  { %s22_s16 = sshll.u32 %s435_s15, 4  ;;  %p364_p0 = scmp.ne.s32.totalorder %s527_s2, %s363_s19  ;;  %s23_s16 = int_to_ptr.vmem [resolvable:$true] %s22_s16 }
   0x4   :  { %p367_p1 = scmp.lt.u32.totalorder %s363_s19, %s527_s2 }
   0x6   :  { %p369_p2 = pnand %p367_p1, %p364_p0 }
   0x8   :  { %372 = shalt.err (!%p369_p2)
}
   0x9   :  { %s373_s24 = scalar_lea.vmem %s23_s16, 2048  ;;  %p378_p4 = scmp.lt.s32.totalorder %s23_s16, %s23_s16 }
   0xa   :  { %p374_p3 = scmp.ne.s32.totalorder %s23_s16, %s373_s24  ;;  %p379_p5 = scmp.lt.s32.totalorder %s373_s24, %s373_s24 }
   0xc   :  { %p380_p6 = por %p379_p5, %p378_p4 }
   0xe   :  { %p381_p7 = pnand %p380_p6, %p374_p3 }
  0x10   :  { %384 = shalt.err (!%p381_p7)
}
  0x11   :  { %s436_s25 = smov 128   ;;  %s437_s26 = smov 8  }
  0x12   :  { %28 = dma.hbm_to_vmem [thread:$0]  %s527_s2, 2048, %s23_s16, [#allocation3], %s436_s25, %s436_s25, %s437_s26  }
  0x13   :  { %429 = dma.done.wait [#allocation3], 2048  }
  0x14   :  { %430 = vsyncadd [#allocation3], 4294965248  ;;  %v438_v0 = vmov 0   ;;  %v38_v1 = vld [vmem:[%s525_s0] sm:$0xff]  ;;  %v64_v3 = vld [vmem:[#allocation2 + $0x8] sm:$0xff]  ;;  %v42_v28 = vlaneseq  ;;  %v439_v31 = vmov 1.0  }
  0x15   :  { %353 = vset.pattern.permute.xlu0 %v438_v0  ;;  %354 = vset.pattern.permute.xlu1 %v438_v0  ;;  %v63_v2 = vld [vmem:[#allocation2] sm:$0xff]  ;;  %v65_v4 = vld [vmem:[#allocation2 + $0x10] sm:$0xff]  ;;  %v39_v5 = vld [vmem:[%s525_s0 + $0x8] sm:$0xff]  ;;  %vm197_vm5 = vcmask 7168   ;;  %vm36_vm6 = vcmask 0  }
  0x16   :  { %52 = vperm.xlu0 %353, %v38_v1   ;;  %v311_v6 = vpack.c.bf16 %v64_v3, %v63_v2  ;;  %v66_v7 = vld [vmem:[#allocation2 + $0x18] sm:$0xff]  ;;  %v67_v9 = vld [vmem:[#allocation2 + $0x20] sm:$0xff]  ;;  %v68_v10 = vld [vmem:[#allocation2 + $0x28] sm:$0xff]  ;;  %v43_v29 = vand.u32 127, %v42_v28  ;;  %v440_v1 = vmov 0.0  }
  0x17   :  { %v315_v8 = vpack.c.bf16 %v66_v7, %v65_v4  ;;  %v40_v11 = vld [vmem:[%s526_s1] sm:$0xff]  ;;  %v319_v12 = vpack.c.bf16 %v68_v10, %v67_v9  ;;  %v69_v13 = vld [vmem:[#allocation2 + $0x30] sm:$0xff]  ;;  %v70_v14 = vld [vmem:[#allocation2 + $0x38] sm:$0xff]  ;;  %37 = vst.msk [vmem:[#allocation6] sm:$0x1] %vm36_vm6, %v440_v1 }
  0x18   :  { %312 = vmatprep.subr.bf16.mxu0 %v311_v6  ;;  %v323_v15 = vpack.c.bf16 %v70_v14, %v69_v13  ;;  %v71_v16 = vld [vmem:[#allocation2 + $0x40] sm:$0xff]  ;;  %v72_v17 = vld [vmem:[#allocation2 + $0x48] sm:$0xff]  ;;  %v73_v19 = vld [vmem:[#allocation2 + $0x50] sm:$0xff]  ;;  %vm154_vm2 = vcmp.lt.s32.totalorder %v43_v29, 29 }
  0x19   :  { %314 = vmatpush3.bf16.msra.mxu0 %v311_v6  ;;  %v327_v18 = vpack.c.bf16 %v72_v17, %v71_v16  ;;  %v74_v20 = vld [vmem:[#allocation2 + $0x58] sm:$0xff]  ;;  %v75_v22 = vld [vmem:[#allocation2 + $0x60] sm:$0xff]  ;;  %v76_v23 = vld [vmem:[#allocation2 + $0x68] sm:$0xff] }
  0x1a   :  { %55 = vperm.xlu0 %353, %v39_v5   ;;  %316 = vmatprep.subr.bf16.mxu0 %v315_v8  ;;  %v331_v21 = vpack.c.bf16 %v74_v20, %v73_v19  ;;  %v335_v24 = vpack.c.bf16 %v76_v23, %v75_v22  ;;  %v77_v25 = vld [vmem:[#allocation2 + $0x70] sm:$0xff]  ;;  %v78_v26 = vld [vmem:[#allocation2 + $0x78] sm:$0xff]  ;;  %v41_v37 = vld [vmem:[%s526_s1 + $0x8] sm:$0xff]  ;;  %s441_s1 = smov [#allocation5]  }
  0x1b   :  { %v339_v27 = vpack.c.bf16 %v78_v26, %v77_v25  ;;  %s228_s9 = sshll.u32 %s441_s1, 4  ;;  %s229_s9 = int_to_ptr.vmem [resolvable:$true] %s228_s9 }
  0x1c   :  { %s385_s10 = scalar_lea.vmem %s229_s9, 256  ;;  %p390_p9 = scmp.lt.s32.totalorder %s229_s9, %s229_s9 }
  0x1d   :  { %318 = vmatpush3.bf16.msra.mxu0 %v315_v8  ;;  %p386_p8 = scmp.ne.s32.totalorder %s229_s9, %s385_s10  ;;  %p391_p10 = scmp.lt.s32.totalorder %s385_s10, %s385_s10 }
  0x1e   :  { %178 = vperm.xlu0 %353, %v40_v11   ;;  %320 = vmatprep.subr.bf16.mxu0 %v319_v12 }
  0x1f   :  { %p392_p11 = por %p391_p10, %p390_p9 }
  0x21   :  { %322 = vmatpush3.bf16.msra.mxu0 %v319_v12  ;;  %p393_p12 = pnand %p392_p11, %p386_p8 }
  0x22   :  { %324 = vmatprep.subr.bf16.mxu0 %v323_v15 }
  0x25   :  { %326 = vmatpush3.bf16.msra.mxu0 %v323_v15 }
  0x26   :  { %328 = vmatprep.subr.bf16.mxu0 %v327_v18 }
  0x29   :  { %330 = vmatpush3.bf16.msra.mxu0 %v327_v18 }
  0x2a   :  { %332 = vmatprep.subr.bf16.mxu0 %v331_v21 }
  0x2d   :  { %334 = vmatpush3.bf16.msra.mxu0 %v331_v21 }
  0x2e   :  { %336 = vmatprep.subr.bf16.mxu0 %v335_v24 }
  0x31   :  { %338 = vmatpush3.bf16.msra.mxu0 %v335_v24 }
  0x32   :  { %340 = vmatprep.subr.bf16.mxu0 %v339_v27 }
  0x35   :  { %342 = vmatpush3.bf16.msra.mxu0 %v339_v27 }
  0x95   :  { %v53_v30 = vpop.permute.xlu0 %52 }
  0x96   :  { %vm57_vm0 = vcmp.eq.s32.totalorder %v43_v29, %v53_v30 }
  0x97   :  { %308 = vmatprep.mubr.msk.f32.mxu0 %vm57_vm0, %v439_v31 }
  0x99   :  { %v56_v32 = vpop.permute.xlu0 %55 }
  0x9a   :  { %vm58_vm1 = vcmp.eq.s32.totalorder %v43_v29, %v56_v32 }
  0x9b   :  { %309 = vmatmul.mubr.msk.f32.vlgmr.msra.gmra.mrb[0].mxu0 %vm58_vm1, %v439_v31 }
  0x9d   :  { %v179_v46 = vpop.permute.xlu0 %178 }
  0x9e   :  { %vm183_vm3 = vcmp.eq.s32.totalorder %v43_v29, %v179_v46 }
 0x16e   :  { %v310_v33 = vpop.f32.mrb[0].mxu0 }
 0x16f   :  { %211 = vst [vmem:[#allocation5 + $0x8] sm:$0xff] %v310_v33  ;;  %v145_v34 = vpop.f32.mrb[1].mxu0  ;;  %v156_v35 = vsel %vm154_vm2, %v310_v33, -inf }
 0x170   :  { %210 = vst [vmem:[#allocation5] sm:$0xff] %v145_v34  ;;  %159 = vmax.xlane.f32.xlu1 %v156_v35  ;;  %v155_v36 = vsel %vm154_vm2, %v145_v34, -inf  ;;  %v185_v48 = vsel %vm183_vm3, %v145_v34, 0.0 }
 0x174   :  { %157 = vmax.xlane.f32.xlu1 %v155_v36 }
 0x185   :  { %181 = vperm.xlu1 %354, %v41_v37  }
 0x1fd   :  { %v160_v38 = vpop.xlane.xlu1 %159 }
 0x1fe   :  { %v162_v39 = vsub.f32 %v156_v35, %v160_v38 }
 0x200   :  { %v165_v40 = vmul.f32 1.442695, %v162_v39 }
 0x201   :  { %v158_v41 = vpop.xlane.xlu1 %157 }
 0x202   :  { %355 = vpow2.f32 %v165_v40  ;;  %v161_v42 = vsub.f32 %v155_v36, %v158_v41 }
 0x204   :  { %v163_v43 = vmul.f32 1.442695, %v161_v42 }
 0x205   :  { %v182_v47 = vpop.permute.xlu1 %181 }
 0x206   :  { %357 = vpow2.f32 %v163_v43  ;;  %vm184_vm4 = vcmp.eq.s32.totalorder %v43_v29, %v182_v47 }
 0x207   :  { %v186_v49 = vsel %vm184_vm4, %v310_v33, 0.0 }
 0x20c   :  { %v356_v44 = vpop.eup %355 }
 0x20d   :  { %169 = vadd.xlane.f32.xlu1 %v356_v44 }
 0x210   :  { %v358_v45 = vpop.eup %357 }
 0x211   :  { %167 = vadd.xlane.f32.xlu0 %v358_v45 }
 0x215   :  { %187 = vadd.xlane.f32.xlu0 %v185_v48 }
 0x219   :  { %189 = vadd.xlane.f32.xlu0 %v186_v49 }
 0x29a   :  { %v170_v50 = vpop.xlane.xlu1 %169 }
 0x29b   :  { %359 = vlog2.f32 %v170_v50 }
 0x29e   :  { %v168_v51 = vpop.xlane.xlu0 %167 }
 0x29f   :  { %361 = vlog2.f32 %v168_v51 }
 0x2a2   :  { %v188_v53 = vpop.xlane.xlu0 %187 }
 0x2a5   :  { %v360_v52 = vpop.eup %359 }
 0x2a6   :  { %v174_v54 = vmul.f32 0.6931472, %v360_v52  ;;  %v190_v58 = vpop.xlane.xlu0 %189 }
 0x2a8   :  { %v176_v55 = vadd.f32 %v174_v54, %v160_v38 }
 0x2a9   :  { %v362_v56 = vpop.eup %361 }
 0x2aa   :  { %v172_v57 = vmul.f32 0.6931472, %v362_v56  ;;  %v194_v60 = vsub.f32 %v176_v55, %v190_v58 }
 0x2ac   :  { %v175_v59 = vadd.f32 %v172_v57, %v158_v41  ;;  %v199_v63 = vsel %vm197_vm5, %v194_v60, 0.0 }
 0x2ae   :  { %v193_v61 = vsub.f32 %v175_v59, %v188_v53 }
 0x2b0   :  { %v198_v62 = vsel %vm197_vm5, %v193_v61, 0.0 }
 0x2b1   :  { %v200_v0 = vadd.f32 %v199_v63, %v198_v62 }
 0x2b3   :  { %201 = vadd.xlane.f32.xlu0 %v200_v0 }
 0x2b4   :  { %396 = shalt.err (!%p393_p12)
}
 0x2b5   :  { %s397_s13 = scalar_lea.hbm %s528_s3, 256 }
 0x2b6   :  { %p398_p13 = scmp.ne.s32.totalorder %s528_s3, %s397_s13  ;;  %p401_p0 = scmp.lt.u32.totalorder %s397_s13, %s528_s3 }
 0x2b8   :  { %p403_p1 = pnand %p401_p0, %p398_p13 }
 0x2ba   :  { %406 = shalt.err (!%p403_p1)
}
 0x2bb   :  { %234 = dma.vmem_to_hbm [thread:$0]  %s229_s9, 256, %s528_s3, [#allocation4], %s436_s25, %s436_s25, %s437_s26   ;;  %v212_v9 = vld [vmem:[#allocation6] sm:$0x1] }
 0x2bc   :  { %s442_s21 = smov [#allocation6]  }
 0x2bd   :  { %s241_s22 = sshll.u32 %s442_s21, 4  ;;  %s242_s22 = int_to_ptr.vmem [resolvable:$true] %s241_s22 }
 0x2be   :  { %s407_s3 = scalar_lea.vmem %s242_s22, 16  ;;  %s411_s23 = scalar_lea.vmem %s242_s22, 32 }
 0x2bf   :  { %p408_p2 = scmp.ne.s32.totalorder %s242_s22, %s407_s3  ;;  %p412_p3 = scmp.lt.s32.totalorder %s242_s22, %s242_s22 }
 0x2c0   :  { %p413_p4 = scmp.lt.s32.totalorder %s411_s23, %s407_s3 }
 0x2c2   :  { %p414_p5 = por %p413_p4, %p412_p3 }
 0x2c4   :  { %p415_p6 = pnand %p414_p5, %p408_p2 }
 0x340   :  { %v202_v2 = vpop.xlane.xlu0 %201 }
 0x341   :  { %v203_v3 = vrot.slane %v202_v2, 4 }
 0x343   :  { %v204_v4 = vadd.f32 %v203_v3, %v202_v2 }
 0x345   :  { %v205_v5 = vrot.slane %v204_v4, 2 }
 0x347   :  { %v206_v6 = vadd.f32 %v205_v5, %v204_v4 }
 0x349   :  { %v207_v7 = vrot.slane %v206_v6, 1 }
 0x34b   :  { %v208_v8 = vadd.f32 %v207_v7, %v206_v6 }
 0x34d   :  { %343 = vpush %v208_v8 }
 0x37e   :  { %s344_s20 = spop %343 }
 0x37f   :  { %v213_v10 = vstv %s344_s20 }
 0x380   :  { %v214_v11 = vadd.f32 %v213_v10, %v212_v9 }
 0x382   :  { %216 = vst.msk [vmem:[#allocation6] sm:$0x1] %vm36_vm6, %v214_v11 }
 0x389   :  { %v220_v12 = vld [vmem:[#allocation6] sm:$0x1] }
 0x38a   :  { %v221_v13 = vmul.f32 0.0625, %v220_v12 }
 0x38c   :  { %222 = vst.msk [vmem:[#allocation6] sm:$0x1] %vm36_vm6, %v221_v13 }
 0x38d   :  { %418 = shalt.err (!%p415_p6)
}
 0x38e   :  { %s419_s26 = scalar_lea.hbm %s529_s4, 16 }
 0x38f   :  { %p420_p7 = scmp.ne.s32.totalorder %s529_s4, %s419_s26  ;;  %p423_p8 = scmp.lt.u32.totalorder %s419_s26, %s529_s4 }
 0x391   :  { %p425_p9 = pnand %p423_p8, %p420_p7 }
 0x393   :  { %428 = shalt.err (!%p425_p9)
}
 0x394   :  { %244 = dma.vmem_to_hbm [thread:$0]  %s242_s22, 16, %s529_s4, [#allocation7]  }
 0x395   :  { %431 = dma.done.wait [#allocation4], 256  }
 0x396   :  { %432 = vsyncadd [#allocation4], 4294967040 }
 0x397   :  { %433 = dma.done.wait [#allocation7], 16  }
 0x398   :  { %434 = vsyncadd [#allocation7], 4294967280 }
 0x399   :  { %251 = vsyncpa [#allocation3], 1 }
 0x39a   :  { %252 = vsyncpa [#allocation4], 1 }
 0x39b   :  { %253 = vsyncpa [#allocation7], 1 }

</bundles_post_ra>
